<compile_context>
chip_gen: v7x
topology: tpu7x:2x2x1
jax: 0.10.0
libtpu: 0.0.40
codegen_flags: <defaults>
</compile_context>

<pallas_src>
import functools

import numpy as np
import jax
import jax.numpy as jnp
from jax.experimental import pallas as pl
from jax.experimental.pallas import tpu as pltpu


def _round_up(x, m):
    return (x + m - 1) // m * m


# ---------------------------------------------------------------------------
# Kernel 1: fused multi-input linear  y = sum_i x_i @ W_i + b   (Q-side only,
# row count is num_queries*bs which is small; inputs stay f32 in HBM and are
# cast to bf16 inside the kernel)
# ---------------------------------------------------------------------------
def _make_fused_linear_kernel(n):
    def kernel(*refs):
        x_refs = refs[:n]
        w_refs = refs[n:2 * n]
        b_ref = refs[2 * n]
        o_ref = refs[2 * n + 1]
        acc = jnp.dot(x_refs[0][...].astype(jnp.bfloat16), w_refs[0][...],
                      preferred_element_type=jnp.float32)
        for i in range(1, n):
            acc = acc + jnp.dot(x_refs[i][...].astype(jnp.bfloat16),
                                w_refs[i][...],
                                preferred_element_type=jnp.float32)
        o_ref[...] = (acc + b_ref[...]).astype(o_ref.dtype)
    return kernel


def fused_linear(xs, ws, bias, *, out_dtype=jnp.float32, max_block_rows=1024):
    """sum_i xs[i] @ ws[i] + bias over the last axis (xs share leading dims)."""
    n = len(xs)
    lead = xs[0].shape[:-1]
    rows = int(np.prod(lead))
    dout = ws[0].shape[1]

    block_rows = min(max_block_rows, _round_up(rows, 16))
    rows_pad = _round_up(rows, block_rows)

    xfs, dins = [], []
    for x in xs:
        xf = x.reshape(rows, x.shape[-1])
        if rows_pad != rows:           # only the tiny Q-side rows ever pad
            xf = jnp.pad(xf, ((0, rows_pad - rows), (0, 0)))
        xfs.append(xf)
        dins.append(xf.shape[1])
    wbs = [w.astype(jnp.bfloat16) for w in ws]          # tiny weights
    b2 = bias.reshape(1, dout).astype(jnp.float32)

    in_specs = (
        [pl.BlockSpec((block_rows, din), lambda r: (r, 0)) for din in dins]
        + [pl.BlockSpec((din, dout), lambda r: (0, 0)) for din in dins]
        + [pl.BlockSpec((1, dout), lambda r: (0, 0))]
    )

    out = pl.pallas_call(
        _make_fused_linear_kernel(n),
        out_shape=jax.ShapeDtypeStruct((rows_pad, dout), out_dtype),
        grid=(rows_pad // block_rows,),
        in_specs=in_specs,
        out_specs=pl.BlockSpec((block_rows, dout), lambda r: (r, 0)),
        compiler_params=pltpu.CompilerParams(
            dimension_semantics=("parallel",)),
    )(*xfs, *wbs, b2)

    if rows_pad != rows:
        out = out[:rows]
    return out.reshape(*lead, dout)


# ---------------------------------------------------------------------------
# Kernel 2: fused K + V projection — memory block is read from HBM once and
# used for both matmuls; outputs are written batch-major and already padded
# to a multiple of the attention kv tile, with pad rows zeroed in-kernel.
# ---------------------------------------------------------------------------
def _kv_proj_kernel(mem_ref, pos_ref, wkm_ref, wkp_ref, wvm_ref, bk_ref,
                    bv_ref, kp_ref, vp_ref, *, tile_s, s_len, s_pad):
    x = mem_ref[...].astype(jnp.bfloat16)          # (tile_s, d)
    p = pos_ref[...].astype(jnp.bfloat16)
    k = (jnp.dot(x, wkm_ref[...], preferred_element_type=jnp.float32)
         + jnp.dot(p, wkp_ref[...], preferred_element_type=jnp.float32)
         + bk_ref[...])
    v = jnp.dot(x, wvm_ref[...], preferred_element_type=jnp.float32) + bv_ref[...]
    if s_pad != s_len:
        row = (pl.program_id(1) * tile_s
               + jax.lax.broadcasted_iota(jnp.int32, (tile_s, 1), 0))
        keep = row < s_len
        # pad rows must be finite zeros so the PV matmul never sees garbage
        k = jnp.where(keep, k, 0.0)
        v = jnp.where(keep, v, 0.0)
    kp_ref[...] = k.astype(kp_ref.dtype)
    vp_ref[...] = v.astype(vp_ref.dtype)


def project_kv(mem_b, pos_b, wk_mem, wk_pos, wv_mem, bk, bv, *, s_len, tk):
    """mem_b/pos_b: (bs, S, d) -> kp (bs, S_pad, 2d) bf16, vp (bs, S_pad, d) bf16."""
    bs, _, d = mem_b.shape
    e = wk_mem.shape[1]
    s_pad = _round_up(s_len, tk)
    n_tiles = s_pad // tk

    kernel = functools.partial(_kv_proj_kernel, tile_s=tk, s_len=s_len,
                               s_pad=s_pad)
    kp, vp = pl.pallas_call(
        kernel,
        out_shape=(jax.ShapeDtypeStruct((bs, s_pad, e), jnp.bfloat16),
                   jax.ShapeDtypeStruct((bs, s_pad, d), jnp.bfloat16)),
        grid=(bs, n_tiles),
        in_specs=[
            pl.BlockSpec((None, tk, d), lambda b, s: (b, s, 0)),   # memory
            pl.BlockSpec((None, tk, d), lambda b, s: (b, s, 0)),   # pos
            pl.BlockSpec((d, e), lambda b, s: (0, 0)),
            pl.BlockSpec((d, e), lambda b, s: (0, 0)),
            pl.BlockSpec((d, d), lambda b, s: (0, 0)),
            pl.BlockSpec((1, e), lambda b, s: (0, 0)),
            pl.BlockSpec((1, d), lambda b, s: (0, 0)),
        ],
        out_specs=(
            pl.BlockSpec((None, tk, e), lambda b, s: (b, s, 0)),
            pl.BlockSpec((None, tk, d), lambda b, s: (b, s, 0)),
        ),
        compiler_params=pltpu.CompilerParams(
            dimension_semantics=("parallel", "parallel")),
    )(mem_b, pos_b,
      wk_mem.astype(jnp.bfloat16), wk_pos.astype(jnp.bfloat16),
      wv_mem.astype(jnp.bfloat16),
      bk.reshape(1, e).astype(jnp.float32),
      bv.reshape(1, d).astype(jnp.float32))
    return kp, vp


# ---------------------------------------------------------------------------
# Kernel 3: flash-style cross attention, all heads of one batch per grid step
# ---------------------------------------------------------------------------
def _attn_kernel(q_ref, k_ref, v_ref, o_ref, m_sc, l_sc, acc_sc, *,
                 nhead, head_dim, v_head_dim, tk, s_valid, needs_mask):
    s_idx = pl.program_id(1)

    @pl.when(s_idx == 0)
    def _init():
        m_sc[...] = jnp.full(m_sc.shape, -jnp.inf, jnp.float32)
        l_sc[...] = jnp.zeros(l_sc.shape, jnp.float32)
        acc_sc[...] = jnp.zeros(acc_sc.shape, jnp.float32)

    q = q_ref[...]            # (Nq, 2d)  bf16   (1/sqrt(hd) already folded in)
    k = k_ref[...]            # (tk, 2d)  bf16
    v = v_ref[...]            # (tk, d)   bf16

    if needs_mask:
        key_pos = s_idx * tk + jax.lax.broadcasted_iota(jnp.int32, (1, tk), 1)
        # additive bias: zero everywhere except the padded tail (padded K rows
        # are exact zeros, so scores there are finite and this add is safe)
        neg = jnp.where(key_pos < s_valid, 0.0, -1e30)

    for h in range(nhead):
        qh = q[:, h * head_dim:(h + 1) * head_dim]
        kh = k[:, h * head_dim:(h + 1) * head_dim]
        vh = v[:, h * v_head_dim:(h + 1) * v_head_dim]

        s = jax.lax.dot_general(qh, kh, (((1,), (1,)), ((), ())),
                                preferred_element_type=jnp.float32)
        if needs_mask:
            s = s + neg

        m_prev = m_sc[h]                                   # (Nq, 1)
        l_prev = l_sc[h]
        m_new = jnp.maximum(m_prev, jnp.max(s, axis=-1, keepdims=True))
        alpha = jnp.exp(m_prev - m_new)
        p = jnp.exp(s - m_new)                             # (Nq, tk) f32
        l_sc[h] = alpha * l_prev + jnp.sum(p, axis=-1, keepdims=True)
        m_sc[h] = m_new
        acc_sc[h] = alpha * acc_sc[h] + jax.lax.dot_general(
            p.astype(v.dtype), vh, (((1,), (0,)), ((), ())),
            preferred_element_type=jnp.float32)

    @pl.when(s_idx == pl.num_programs(1) - 1)
    def _finalize():
        outs = []
        for h in range(nhead):
            inv_l = pl.reciprocal(l_sc[h], approx=True)
            outs.append(acc_sc[h] * inv_l)
        # single lane-dense store of all heads (bf16 intermediate)
        o_ref[...] = jnp.concatenate(outs, axis=-1).astype(o_ref.dtype)


def flash_cross_attention(qp, kp, vp, *, nhead, s_valid, tk):
    """qp: (bs, Nq, 2d), kp: (bs, S_pad, 2d), vp: (bs, S_pad, d) -> (bs, Nq, d) bf16."""
    bs, nq, e = qp.shape
    s_pad = kp.shape[1]
    d = vp.shape[2]
    head_dim = e // nhead
    v_head_dim = d // nhead

    kernel = functools.partial(
        _attn_kernel, nhead=nhead, head_dim=head_dim, v_head_dim=v_head_dim,
        tk=tk, s_valid=s_valid, needs_mask=(s_pad != s_valid))

    return pl.pallas_call(
        kernel,
        out_shape=jax.ShapeDtypeStruct((bs, nq, d), jnp.bfloat16),
        grid=(bs, s_pad // tk),
        in_specs=[
            pl.BlockSpec((None, nq, e), lambda b, s: (b, 0, 0)),
            pl.BlockSpec((None, tk, e), lambda b, s: (b, s, 0)),
            pl.BlockSpec((None, tk, d), lambda b, s: (b, s, 0)),
        ],
        out_specs=pl.BlockSpec((None, nq, d), lambda b, s: (b, 0, 0)),
        scratch_shapes=[
            pltpu.VMEM((nhead, nq, 1), jnp.float32),            # running max
            pltpu.VMEM((nhead, nq, 1), jnp.float32),            # running sum
            pltpu.VMEM((nhead, nq, v_head_dim), jnp.float32),   # accumulator
        ],
        compiler_params=pltpu.CompilerParams(
            dimension_semantics=("parallel", "arbitrary")),
    )(qp, kp, vp)


# ---------------------------------------------------------------------------
# Kernel 4: fused out_proj + residual add + LayerNorm (row-tiled, 'parallel')
# ---------------------------------------------------------------------------
def _out_ln_kernel(attn_ref, res_ref, wo_ref, bo_ref, g_ref, b_ref, o_ref, *,
                   eps):
    y = jnp.dot(attn_ref[...], wo_ref[...],
                preferred_element_type=jnp.float32) + bo_ref[...]
    z = res_ref[...] + y
    mean = jnp.mean(z, axis=-1, keepdims=True)
    var = jnp.mean(jnp.square(z - mean), axis=-1, keepdims=True)
    o_ref[...] = ((z - mean) * jax.lax.rsqrt(var + eps) * g_ref[...]
                  + b_ref[...]).astype(o_ref.dtype)


def out_proj_residual_layernorm(attn, residual, wo, bo, gamma, beta, *,
                                eps=1e-5, max_block_rows=1024):
    lead = attn.shape[:-1]
    d = attn.shape[-1]
    rows = int(np.prod(lead))
    a = attn.reshape(rows, d)                        # bf16
    r = residual.reshape(rows, d)                    # f32

    block_rows = min(max_block_rows, _round_up(rows, 16))
    rows_pad = _round_up(rows, block_rows)
    if rows_pad != rows:                             # tiny (Nq*bs) rows only
        a = jnp.pad(a, ((0, rows_pad - rows), (0, 0)))
        r = jnp.pad(r, ((0, rows_pad - rows), (0, 0)))

    out = pl.pallas_call(
        functools.partial(_out_ln_kernel, eps=eps),
        out_shape=jax.ShapeDtypeStruct((rows_pad, d), jnp.float32),
        grid=(rows_pad // block_rows,),
        in_specs=[
            pl.BlockSpec((block_rows, d), lambda i: (i, 0)),
            pl.BlockSpec((block_rows, d), lambda i: (i, 0)),
            pl.BlockSpec((d, d), lambda i: (0, 0)),
            pl.BlockSpec((1, d), lambda i: (0, 0)),
            pl.BlockSpec((1, d), lambda i: (0, 0)),
            pl.BlockSpec((1, d), lambda i: (0, 0)),
        ],
        out_specs=pl.BlockSpec((block_rows, d), lambda i: (i, 0)),
        compiler_params=pltpu.CompilerParams(
            dimension_semantics=("parallel",)),
    )(a, r, wo.astype(jnp.bfloat16), bo.reshape(1, d).astype(jnp.float32),
      gamma.reshape(1, d).astype(jnp.float32),
      beta.reshape(1, d).astype(jnp.float32))

    if rows_pad != rows:
        out = out[:rows]
    return out.reshape(*lead, d)


# ---------------------------------------------------------------------------
# Parameters (deterministic, synthetic — no checkpoint load)
# ---------------------------------------------------------------------------
def _xavier(key, fan_in, fan_out):
    lim = (6.0 / (fan_in + fan_out)) ** 0.5
    return jax.random.uniform(
        key, (fan_in, fan_out), jnp.float32, minval=-lim, maxval=lim)


def init_params(key, d_model, nhead, points_num=1):
    keys = jax.random.split(key, 16)
    ed = 2 * d_model
    return {
        "nhead": nhead,
        "Wqc": _xavier(keys[0], d_model, d_model), "bqc": jnp.zeros((d_model,), jnp.float32),
        "Wkc": _xavier(keys[1], d_model, d_model), "bkc": jnp.zeros((d_model,), jnp.float32),
        "Wv":  _xavier(keys[2], d_model, d_model), "bv":  jnp.zeros((d_model,), jnp.float32),
        "Wkp": _xavier(keys[3], d_model, d_model), "bkp": jnp.zeros((d_model,), jnp.float32),
        "Wqp": _xavier(keys[4], d_model, d_model), "bqp": jnp.zeros((d_model,), jnp.float32),
        "Wqs": _xavier(keys[5], d_model * 2 * points_num, d_model),
        "bqs": jnp.zeros((d_model,), jnp.float32),
        "Wq_attn": _xavier(keys[6], ed, ed), "bq_attn": jnp.zeros((ed,), jnp.float32),
        "Wk_attn": _xavier(keys[7], ed, ed), "bk_attn": jnp.zeros((ed,), jnp.float32),
        "Wv_attn": _xavier(keys[8], d_model, d_model), "bv_attn": jnp.zeros((d_model,), jnp.float32),
        "Wo_attn": _xavier(keys[9], d_model, d_model), "bo_attn": jnp.zeros((d_model,), jnp.float32),
        "ln_g": jnp.ones((d_model,), jnp.float32),
        "ln_b": jnp.zeros((d_model,), jnp.float32),
    }


def _head_interleave_perm(d_model, nhead):
    """Inverse of the per-head [content | pos/sine] interleave permutation."""
    hd = d_model // nhead
    perm = []
    for h in range(nhead):
        perm.extend(range(h * hd, (h + 1) * hd))                      # content
        perm.extend(range(d_model + h * hd, d_model + (h + 1) * hd))  # pos/sine
    return np.argsort(np.asarray(perm, dtype=np.int64))


# ---------------------------------------------------------------------------
# Forward pass (forward_post semantics; dropout=0 -> identity; mask=None path)
# ---------------------------------------------------------------------------
def cross_attention_layer(p, tgt, memory, pos, query_pos, query_sine_embed,
                          is_first=False, *, max_kv_block=1024):
    nq, bs, d = tgt.shape
    s_len = memory.shape[0]
    nhead = p["nhead"]
    e = 2 * d
    head_dim = e // nhead
    scale = float(head_dim) ** -0.5

    # Fold the per-head concat permutation, the attention in-projections and
    # the q scale into the first-stage weights (tiny (d x 2d) matmuls, XLA).
    inv_perm = _head_interleave_perm(d, nhead)
    wq_fold = p["Wq_attn"][inv_perm]
    wk_fold = p["Wk_attn"][inv_perm]
    a_q, b_q = wq_fold[:d], wq_fold[d:]
    a_k, b_k = wk_fold[:d], wk_fold[d:]

    wq_tgt = (p["Wqc"] @ a_q) * scale
    wq_sine = (p["Wqs"] @ b_q) * scale
    bq = (p["bqc"] @ a_q + p["bqs"] @ b_q + p["bq_attn"]) * scale
    wk_mem = p["Wkc"] @ a_k
    if is_first:
        wq_pos = (p["Wqp"] @ a_q) * scale
        bq = bq + (p["bqp"] @ a_q) * scale
        k_pos_mix = a_k + b_k
    else:
        k_pos_mix = b_k
    wk_pos = p["Wkp"] @ k_pos_mix
    bk = p["bkc"] @ a_k + p["bkp"] @ k_pos_mix + p["bk_attn"]
    wv_mem = p["Wv"] @ p["Wv_attn"]
    bv = p["bv"] @ p["Wv_attn"] + p["bv_attn"]

    # kv tile (16-granular for bf16 sublane packing, never larger than S)
    tk = min(max_kv_block, max(16, (s_len // 16) * 16))

    # Big (hw, bs, d) tensors: batch-major layout for the kernels.
    if bs == 1:
        mem_b = memory.reshape(1, s_len, d)           # free reshape, f32
        pos_b = pos.reshape(1, s_len, d)
    else:
        # TODO(synk): for bs>1 one transposed copy of memory/pos remains
        # (fused with the bf16 cast); folding it into the projection BlockSpec
        # would need sublane-size-1 input blocks.
        mem_b = jnp.transpose(memory, (1, 0, 2)).astype(jnp.bfloat16)
        pos_b = jnp.transpose(pos, (1, 0, 2)).astype(jnp.bfloat16)

    # Small Q-side tensors (num_queries*bs rows): transposes are negligible.
    tgt_b = jnp.transpose(tgt, (1, 0, 2))             # (bs, Nq, d) f32
    sine_b = jnp.transpose(query_sine_embed, (1, 0, 2))
    q_xs, q_ws = [tgt_b, sine_b], [wq_tgt, wq_sine]
    if is_first:
        q_xs.append(jnp.transpose(query_pos, (1, 0, 2)))
        q_ws.append(wq_pos)

    qp = fused_linear(q_xs, q_ws, bq, out_dtype=jnp.bfloat16)   # (bs, Nq, 2d)
    kp, vp = project_kv(mem_b, pos_b, wk_mem, wk_pos, wv_mem, bk, bv,
                        s_len=s_len, tk=tk)                     # pre-padded

    attn = flash_cross_attention(qp, kp, vp, nhead=nhead,
                                 s_valid=s_len, tk=tk)          # (bs, Nq, d) bf16

    out_b = out_proj_residual_layernorm(
        attn, tgt_b, p["Wo_attn"], p["bo_attn"], p["ln_g"], p["ln_b"])
    return jnp.transpose(out_b, (1, 0, 2))                      # (Nq, bs, d)


# ---------------------------------------------------------------------------
# Pure-JAX reference of the original (unfused) math, for verification
# ---------------------------------------------------------------------------
def reference_forward(p, tgt, memory, pos, query_pos, qse, is_first=False):
    nq, bs, d = tgt.shape
    s_len = memory.shape[0]
    nhead = p["nhead"]
    hd = d // nhead
    lin = lambda x, w, b: x @ w + b

    q_content = lin(tgt, p["Wqc"], p["bqc"])
    k_content = lin(memory, p["Wkc"], p["bkc"])
    v = lin(memory, p["Wv"], p["bv"])
    k_pos = lin(pos, p["Wkp"], p["bkp"])
    if is_first:
        q_pos = lin(query_pos, p["Wqp"], p["bqp"])
        q = q_content + q_pos
        k = k_content + k_pos
    else:
        q = q_content
        k = k_content
    qse_p = lin(qse, p["Wqs"], p["bqs"])
    q = jnp.concatenate([q.reshape(nq, bs, nhead, hd),
                         qse_p.reshape(nq, bs, nhead, hd)], axis=3).reshape(nq, bs, 2 * d)
    k = jnp.concatenate([k.reshape(s_len, bs, nhead, hd),
                         k_pos.reshape(s_len, bs, nhead, hd)], axis=3).reshape(s_len, bs, 2 * d)

    e = 2 * d
    head_dim = e // nhead
    vhd = d // nhead
    scale = float(head_dim) ** -0.5
    qp = lin(q, p["Wq_attn"], p["bq_attn"]) * scale
    kp = lin(k, p["Wk_attn"], p["bk_attn"])
    vp = lin(v, p["Wv_attn"], p["bv_attn"])
    q4 = qp.reshape(nq, bs, nhead, head_dim).transpose(1, 2, 0, 3)
    k4 = kp.reshape(s_len, bs, nhead, head_dim).transpose(1, 2, 0, 3)
    v4 = vp.reshape(s_len, bs, nhead, vhd).transpose(1, 2, 0, 3)
    s = jnp.einsum("bhqd,bhkd->bhqk", q4, k4)
    a = jax.nn.softmax(s, axis=-1)
    o = jnp.einsum("bhqk,bhkd->bhqd", a, v4).transpose(2, 0, 1, 3).reshape(nq, bs, d)
    tgt2 = lin(o, p["Wo_attn"], p["bo_attn"])
    z = tgt + tgt2
    mean = z.mean(-1, keepdims=True)
    var = ((z - mean) ** 2).mean(-1, keepdims=True)
    return (z - mean) / jnp.sqrt(var + 1e-5) * p["ln_g"] + p["ln_b"]


# ---------------------------------------------------------------------------
if __name__ == "__main__":
    d_model, nhead, points_num = 32, 4, 1
    key = jax.random.PRNGKey(0)
    kp_, kt, km, kpos, kqp, kqs = jax.random.split(key, 6)
    params = init_params(kp_, d_model, nhead, points_num)

    # (num_queries, bs, hw): second config exercises the ragged / masked paths
    # (hw not a multiple of the kv tile, bs==1 reshape path, odd num_queries).
    configs = [(8, 2, 16), (9, 1, 20)]

    for (num_queries, bs, hw) in configs:
        tgt = jax.random.normal(kt, (num_queries, bs, d_model), jnp.float32)
        memory = jax.random.normal(km, (hw, bs, d_model), jnp.float32)
        pos = jax.random.normal(kpos, (hw, bs, d_model), jnp.float32)
        query_pos = jax.random.normal(kqp, (num_queries, bs, d_model), jnp.float32)
        query_sine_embed = jax.random.normal(
            kqs, (num_queries, bs, d_model * 2 * points_num), jnp.float32)

        for first in (True, False):
            out = cross_attention_layer(
                params, tgt, memory, pos, query_pos, query_sine_embed,
                is_first=first)
            out = jax.block_until_ready(out)
            assert out.shape == (num_queries, bs, d_model)
            assert bool(jnp.all(jnp.isfinite(out)))

            ref = jax.block_until_ready(reference_forward(
                params, tgt, memory, pos, query_pos, query_sine_embed,
                is_first=first))
            max_err = float(jnp.max(jnp.abs(out - ref)))
            # bf16 matmul operands (f32 accumulate) -> loose tolerance
            assert max_err < 0.2, (
                f"mismatch vs reference (cfg={(num_queries, bs, hw)}, "
                f"is_first={first}): {max_err}")

    print("KERNEL_OK")
</pallas_src>

<mosaic_0001>
module attributes {stable_mosaic.version = 11 : i64} {
  func.func @kernel(%arg0: i32, %arg1: memref<16x32xf32, #tpu.memory_space<vmem>>, %arg2: memref<16x64xf32, #tpu.memory_space<vmem>>, %arg3: memref<16x32xf32, #tpu.memory_space<vmem>>, %arg4: memref<32x64xbf16, #tpu.memory_space<vmem>>, %arg5: memref<64x64xbf16, #tpu.memory_space<vmem>>, %arg6: memref<32x64xbf16, #tpu.memory_space<vmem>>, %arg7: memref<1x64xf32, #tpu.memory_space<vmem>>, %arg8: memref<16x64xbf16, #tpu.memory_space<vmem>>) attributes {dimension_semantics = [#tpu.dimension_semantics<parallel>], iteration_bounds = array<i64: 1>, scalar_prefetch = 0 : i64, scratch_operands = 0 : i64, tpu.core_type = #tpu.core_type<tc>, window_params = [{transform_indices = @transform_0, window_bounds = array<i64: 16, 32>}, {transform_indices = @transform_1, window_bounds = array<i64: 16, 64>}, {transform_indices = @transform_2, window_bounds = array<i64: 16, 32>}, {pipeline_mode = #tpu.pipeline_mode<synchronous>, transform_indices = @transform_3, window_bounds = array<i64: 32, 64>}, {pipeline_mode = #tpu.pipeline_mode<synchronous>, transform_indices = @transform_4, window_bounds = array<i64: 64, 64>}, {pipeline_mode = #tpu.pipeline_mode<synchronous>, transform_indices = @transform_5, window_bounds = array<i64: 32, 64>}, {pipeline_mode = #tpu.pipeline_mode<synchronous>, transform_indices = @transform_6, window_bounds = array<i64: 1, 64>}, {transform_indices = @transform_7, window_bounds = array<i64: 16, 64>}]} {
    %c0 = arith.constant 0 : index
    %c0_0 = arith.constant 0 : index
    %0 = vector.load %arg1[%c0, %c0_0] : memref<16x32xf32, #tpu.memory_space<vmem>>, vector<16x32xf32>
    %1 = arith.truncf %0 : vector<16x32xf32> to vector<16x32xbf16>
    %c0_1 = arith.constant 0 : index
    %c0_2 = arith.constant 0 : index
    %2 = vector.load %arg4[%c0_1, %c0_2] : memref<32x64xbf16, #tpu.memory_space<vmem>>, vector<32x64xbf16>
    %cst = arith.constant dense<0.000000e+00> : vector<16x64xf32>
    %3 = tpu.matmul %1, %2, %cst {dimension_numbers = #tpu.dot_dimension_numbers<[1], [0], [0], [1], [0, 0, 1, 1], [], []>} : vector<16x32xbf16>, vector<32x64xbf16>, vector<16x64xf32> -> vector<16x64xf32>
    %c0_3 = arith.constant 0 : index
    %c0_4 = arith.constant 0 : index
    %4 = vector.load %arg2[%c0_3, %c0_4] : memref<16x64xf32, #tpu.memory_space<vmem>>, vector<16x64xf32>
    %5 = arith.truncf %4 : vector<16x64xf32> to vector<16x64xbf16>
    %c0_5 = arith.constant 0 : index
    %c0_6 = arith.constant 0 : index
    %6 = vector.load %arg5[%c0_5, %c0_6] : memref<64x64xbf16, #tpu.memory_space<vmem>>, vector<64x64xbf16>
    %cst_7 = arith.constant dense<0.000000e+00> : vector<16x64xf32>
    %7 = tpu.matmul %5, %6, %cst_7 {dimension_numbers = #tpu.dot_dimension_numbers<[1], [0], [0], [1], [0, 0, 1, 1], [], []>} : vector<16x64xbf16>, vector<64x64xbf16>, vector<16x64xf32> -> vector<16x64xf32>
    %8 = arith.addf %3, %7 : vector<16x64xf32>
    %c0_8 = arith.constant 0 : index
    %c0_9 = arith.constant 0 : index
    %9 = vector.load %arg3[%c0_8, %c0_9] : memref<16x32xf32, #tpu.memory_space<vmem>>, vector<16x32xf32>
    %10 = arith.truncf %9 : vector<16x32xf32> to vector<16x32xbf16>
    %c0_10 = arith.constant 0 : index
    %c0_11 = arith.constant 0 : index
    %11 = vector.load %arg6[%c0_10, %c0_11] : memref<32x64xbf16, #tpu.memory_space<vmem>>, vector<32x64xbf16>
    %cst_12 = arith.constant dense<0.000000e+00> : vector<16x64xf32>
    %12 = tpu.matmul %10, %11, %cst_12 {dimension_numbers = #tpu.dot_dimension_numbers<[1], [0], [0], [1], [0, 0, 1, 1], [], []>} : vector<16x32xbf16>, vector<32x64xbf16>, vector<16x64xf32> -> vector<16x64xf32>
    %13 = arith.addf %8, %12 : vector<16x64xf32>
    %c0_13 = arith.constant 0 : index
    %c0_14 = arith.constant 0 : index
    %14 = vector.load %arg7[%c0_13, %c0_14] : memref<1x64xf32, #tpu.memory_space<vmem>>, vector<1x64xf32>
    %15 = vector.broadcast %14 : vector<1x64xf32> to vector<16x64xf32>
    %16 = arith.addf %13, %15 : vector<16x64xf32>
    %17 = arith.truncf %16 : vector<16x64xf32> to vector<16x64xbf16>
    %c0_15 = arith.constant 0 : index
    %c0_16 = arith.constant 0 : index
    %18 = vector.load %arg8[%c0_15, %c0_16] : memref<16x64xbf16, #tpu.memory_space<vmem>>, vector<16x64xbf16>
    tpu.vector_store %arg8[%c0_15, %c0_16], %17 {strides = array<i32>} : memref<16x64xbf16, #tpu.memory_space<vmem>>, vector<16x64xbf16>,
    return
  }
  func.func @transform_0(%arg0: i32) -> (i32, i32) {
    %c0_i32 = arith.constant 0 : i32
    %c0_i32_0 = arith.constant 0 : i32
    return %arg0, %c0_i32 : i32, i32
  }
  func.func @transform_1(%arg0: i32) -> (i32, i32) {
    %c0_i32 = arith.constant 0 : i32
    %c0_i32_0 = arith.constant 0 : i32
    return %arg0, %c0_i32 : i32, i32
  }
  func.func @transform_2(%arg0: i32) -> (i32, i32) {
    %c0_i32 = arith.constant 0 : i32
    %c0_i32_0 = arith.constant 0 : i32
    return %arg0, %c0_i32 : i32, i32
  }
  func.func @transform_3(%arg0: i32) -> (i32, i32) {
    %c0_i32 = arith.constant 0 : i32
    %c0_i32_0 = arith.constant 0 : i32
    %c0_i32_1 = arith.constant 0 : i32
    return %c0_i32, %c0_i32_0 : i32, i32
  }
  func.func @transform_4(%arg0: i32) -> (i32, i32) {
    %c0_i32 = arith.constant 0 : i32
    %c0_i32_0 = arith.constant 0 : i32
    %c0_i32_1 = arith.constant 0 : i32
    return %c0_i32, %c0_i32_0 : i32, i32
  }
  func.func @transform_5(%arg0: i32) -> (i32, i32) {
    %c0_i32 = arith.constant 0 : i32
    %c0_i32_0 = arith.constant 0 : i32
    %c0_i32_1 = arith.constant 0 : i32
    return %c0_i32, %c0_i32_0 : i32, i32
  }
  func.func @transform_6(%arg0: i32) -> (i32, i32) {
    %c0_i32 = arith.constant 0 : i32
    %c0_i32_0 = arith.constant 0 : i32
    %c0_i32_1 = arith.constant 0 : i32
    return %c0_i32, %c0_i32_0 : i32, i32
  }
  func.func @transform_7(%arg0: i32) -> (i32, i32) {
    %c0_i32 = arith.constant 0 : i32
    %c0_i32_0 = arith.constant 0 : i32
    return %arg0, %c0_i32 : i32, i32
  }
}

</mosaic_0001>

<bundles_post_ra>
// kernel: tpu_custom_call.1
= control target key start
LH: loop header
LB: loop body
LE: loop exit
PB: predicated region body
PF: predicated region fallthrough
CT: control target
= control target key end

     0   :  { %12 = vsyncpa [#allocation3], 0  ;;  %s729_s0 = inlined_call_operand.hbm [shape: f32[16,32], index: 0, kind: input, shape index: {}]   ;;  %s730_s1 = inlined_call_operand.hbm [shape: f32[16,64], index: 1, kind: input, shape index: {}]   ;;  %s731_s2 = inlined_call_operand.hbm [shape: f32[16,32], index: 2, kind: input, shape index: {}]   ;;  %s732_s3 = inlined_call_operand.hbm [shape: bf16[32,64], index: 3, kind: input, shape index: {}]   ;;  %s733_s4 = inlined_call_operand.hbm [shape: bf16[64,64], index: 4, kind: input, shape index: {}]   ;;  %s734_s5 = inlined_call_operand.vmem [shape: bf16[32,64], index: 5, kind: input, shape index: {}]   ;;  %s735_s6 = inlined_call_operand.vmem [shape: f32[1,64], index: 6, kind: input, shape index: {}]   ;;  %s736_s7 = inlined_call_operand.hbm [shape: bf16[16,64], index: 7, kind: output, shape index: {}]  }
   0x1   :  { %13 = vsyncpa [#allocation6], 0 }
   0x2   :  { %14 = vsyncpa [#allocation9], 0 }
   0x3   :  { %15 = vsyncpa [#allocation4], 0  ;;  %s559_s24 = smov [#allocation5]   ;;  %s560_s26 = smov [#allocation8]  }
   0x4   :  { %s33_s25 = sshll.u32 %s559_s24, 4  ;;  %s57_s27 = sshll.u32 %s560_s26, 4  ;;  %s34_s25 = int_to_ptr.vmem [resolvable:$true] %s33_s25  ;;  %s611_s27 = int_to_ptr.vmem [resolvable:$true] %s57_s27 }
   0x5   :  { %s419_s30 = scalar_lea.hbm %s730_s1, 256 }
   0x6   :  { %p420_p0 = scmp.ne.s32.totalorder %s730_s1, %s419_s30  ;;  %p423_p1 = scmp.lt.u32.totalorder %s419_s30, %s730_s1 }
   0x8   :  { %p425_p2 = pnand %p423_p1, %p420_p0 }
   0xa   :  { %428 = shalt.err (!%p425_p2)
}
   0xb   :  { %s429_s12 = scalar_lea.vmem %s34_s25, 256  ;;  %p434_p4 = scmp.lt.s32.totalorder %s34_s25, %s34_s25 }
   0xc   :  { %p430_p3 = scmp.ne.s32.totalorder %s34_s25, %s429_s12  ;;  %p435_p5 = scmp.lt.s32.totalorder %s429_s12, %s429_s12 }
   0xe   :  { %p436_p6 = por %p435_p5, %p434_p4 }
  0x10   :  { %p437_p7 = pnand %p436_p6, %p430_p3 }
  0x12   :  { %440 = shalt.err (!%p437_p7)
}
  0x13   :  { %s561_s13 = smov 128   ;;  %s562_s14 = smov 8  }
  0x14   :  { %39 = dma.hbm_to_vmem [thread:$0]  %s730_s1, 256, %s34_s25, [#allocation6], %s561_s13, %s561_s13, %s562_s14  }
  0x15   :  { %s441_s19 = scalar_lea.hbm %s732_s3, 256 }
  0x16   :  { %p442_p8 = scmp.ne.s32.totalorder %s732_s3, %s441_s19  ;;  %p445_p9 = scmp.lt.u32.totalorder %s441_s19, %s732_s3 }
  0x18   :  { %p447_p10 = pnand %p445_p9, %p442_p8 }
  0x1a   :  { %450 = shalt.err (!%p447_p10)
}
  0x1b   :  { %s451_s24 = scalar_lea.vmem %s611_s27, 256  ;;  %p456_p12 = scmp.lt.s32.totalorder %s611_s27, %s611_s27 }
  0x1c   :  { %p452_p11 = scmp.ne.s32.totalorder %s611_s27, %s451_s24  ;;  %p457_p13 = scmp.lt.s32.totalorder %s451_s24, %s451_s24 }
  0x1e   :  { %p458_p0 = por %p457_p13, %p456_p12 }
  0x20   :  { %p459_p1 = pnand %p458_p0, %p452_p11 }
  0x22   :  { %462 = shalt.err (!%p459_p1)
}
  0x23   :  { %s563_s1 = smov 64   ;;  %s564_s25 = smov 4  }
  0x24   :  { %63 = dma.hbm_to_vmem [thread:$0]  %s732_s3, 256, %s611_s27, [#allocation9], %s563_s1, %s563_s1, %s564_s25  }
  0x25   :  { %s565_s29 = smov [#allocation2]   ;;  %s566_s8 = smov [#allocation7]  }
  0x26   :  { %s21_s30 = sshll.u32 %s565_s29, 4  ;;  %s45_s9 = sshll.u32 %s566_s8, 4  ;;  %s22_s30 = int_to_ptr.vmem [resolvable:$true] %s21_s30  ;;  %s648_s9 = int_to_ptr.vmem [resolvable:$true] %s45_s9 }
  0x27   :  { %s463_s12 = scalar_lea.hbm %s729_s0, 256 }
  0x28   :  { %p464_p2 = scmp.ne.s32.totalorder %s729_s0, %s463_s12  ;;  %p467_p3 = scmp.lt.u32.totalorder %s463_s12, %s729_s0 }
  0x2a   :  { %p469_p4 = pnand %p467_p3, %p464_p2 }
  0x2c   :  { %472 = shalt.err (!%p469_p4)
}
  0x2d   :  { %s473_s3 = scalar_lea.vmem %s22_s30, 256  ;;  %p478_p6 = scmp.lt.s32.totalorder %s22_s30, %s22_s30 }
  0x2e   :  { %p474_p5 = scmp.ne.s32.totalorder %s22_s30, %s473_s3  ;;  %p479_p7 = scmp.lt.s32.totalorder %s473_s3, %s473_s3 }
  0x30   :  { %p480_p8 = por %p479_p7, %p478_p6 }
  0x32   :  { %p481_p9 = pnand %p480_p8, %p474_p5 }
  0x34   :  { %484 = shalt.err (!%p481_p9)
}
  0x35   :  { %27 = dma.hbm_to_vmem [thread:$0]  %s729_s0, 256, %s22_s30, [#allocation3], %s561_s13, %s561_s13, %s562_s14  }
  0x36   :  { %s485_s22 = scalar_lea.hbm %s731_s2, 256 }
  0x37   :  { %p486_p10 = scmp.ne.s32.totalorder %s731_s2, %s485_s22  ;;  %p489_p11 = scmp.lt.u32.totalorder %s485_s22, %s731_s2 }
  0x39   :  { %p491_p12 = pnand %p489_p11, %p486_p10 }
  0x3b   :  { %494 = shalt.err (!%p491_p12)
}
  0x3c   :  { %s495_s29 = scalar_lea.vmem %s648_s9, 256  ;;  %p500_p0 = scmp.lt.s32.totalorder %s648_s9, %s648_s9 }
  0x3d   :  { %p496_p13 = scmp.ne.s32.totalorder %s648_s9, %s495_s29  ;;  %p501_p1 = scmp.lt.s32.totalorder %s495_s29, %s495_s29 }
  0x3f   :  { %p502_p2 = por %p501_p1, %p500_p0 }
  0x41   :  { %p503_p3 = pnand %p502_p2, %p496_p13 }
  0x43   :  { %506 = shalt.err (!%p503_p3)
}
  0x44   :  { %51 = dma.hbm_to_vmem [thread:$0]  %s731_s2, 256, %s648_s9, [#allocation6], %s561_s13, %s561_s13, %s562_s14  }
  0x45   :  { %s567_s8 = smov [#allocation10]   ;;  %s507_s15 = scalar_lea.hbm %s733_s4, 512 }
  0x46   :  { %s69_s10 = sshll.u32 %s567_s8, 4  ;;  %p508_p4 = scmp.ne.s32.totalorder %s733_s4, %s507_s15  ;;  %s70_s10 = int_to_ptr.vmem [resolvable:$true] %s69_s10 }
  0x47   :  { %p511_p5 = scmp.lt.u32.totalorder %s507_s15, %s733_s4 }
  0x49   :  { %p513_p6 = pnand %p511_p5, %p508_p4 }
  0x4b   :  { %516 = shalt.err (!%p513_p6)
}
  0x4c   :  { %s517_s27 = scalar_lea.vmem %s70_s10, 512  ;;  %p522_p8 = scmp.lt.s32.totalorder %s70_s10, %s70_s10 }
  0x4d   :  { %p518_p7 = scmp.ne.s32.totalorder %s70_s10, %s517_s27  ;;  %p523_p9 = scmp.lt.s32.totalorder %s517_s27, %s517_s27 }
  0x4f   :  { %p524_p10 = por %p523_p9, %p522_p8 }
  0x51   :  { %p525_p11 = pnand %p524_p10, %p518_p7 }
  0x53   :  { %528 = shalt.err (!%p525_p11)
}
  0x54   :  { %75 = dma.hbm_to_vmem [thread:$0]  %s733_s4, 512, %s70_s10, [#allocation9], %s563_s1, %s563_s1, %s564_s25  }
  0x55   :  { %551 = dma.done.wait [#allocation3], 256  }
  0x56   :  { %552 = vsyncadd [#allocation3], 4294967040 }
  0x57   :  { %553 = dma.done.wait [#allocation6], 512  }
  0x58   :  { %554 = vsyncadd [#allocation6], 4294966784 }
  0x59   :  { %555 = dma.done.wait [#allocation9], 768  }
  0x5a   :  { %556 = vsyncadd [#allocation9], 4294966528  ;;  %v568_v0 = vmov 0.0   ;;  %vm569_vm0 = vmmov 0   ;;  %v411_v1 = vld [vmem:[#allocation10] sm:$0xff]   ;;  %v412_v2 = vld [vmem:[#allocation8] sm:$0xff]  }
  0x5b   :  { %371 = vmatprep.subr.bf16.mxu0 %v568_v0  ;;  %383 = vmatprep.subr.bf16.mxu1 %v568_v0  ;;  %v413_v3 = vld [vmem:[#allocation10 + $0x8] sm:$0xff]   ;;  %v414_v4 = vld [vmem:[#allocation8 + $0x8] sm:$0xff]   ;;  %v96_v5 = vld [vmem:[#allocation2] sm:$0xff]  ;;  %vm195_vm1 = vcmask 261120   ;;  %vm138_vm2 = vcmask 523264   ;;  %vm322_vm3 = vcmask 519168  }
  0x5c   :  { %387 = vmatprep.mubr.msk.bf16.mxu1 %vm569_vm0, %v568_v0  ;;  %379 = vmatprep.mubr.msk.bf16.mxu0 %vm569_vm0, %v568_v0  ;;  %v97_v6 = vld [vmem:[#allocation2 + $0x8] sm:$0xff]  ;;  %v415_v8 = vld [vmem:[#allocation10 + $0x10] sm:$0xff]   ;;  %v416_v9 = vld [vmem:[%s734_s5] sm:$0xff]   ;;  %s570_s21 = smov [#allocation11]  }
  0x5d   :  { %372 = vmatpush3.bf16.msra.mxu0 %v411_v1  ;;  %384 = vmatpush3.bf16.msra.mxu1 %v412_v2  ;;  %v98_v7 = vpack.c.bf16 %v97_v6, %v96_v5  ;;  %v417_v10 = vld [vmem:[#allocation10 + $0x18] sm:$0xff]   ;;  %v103_v11 = vld [vmem:[#allocation5] sm:$0xff]  ;;  %v418_v13 = vld [vmem:[%s734_s5 + $0x8] sm:$0xff]   ;;  %s330_s22 = sshll.u32 %s570_s21, 4  ;;  %s331_s22 = int_to_ptr.vmem [resolvable:$true] %s330_s22 }
  0x5e   :  { %373 = vmatprep.subr.bf16.mxu0 %v568_v0  ;;  %385 = vmatprep.subr.bf16.mxu1 %v568_v0  ;;  %v104_v12 = vld [vmem:[#allocation5 + $0x8] sm:$0xff]  ;;  %v240_v14 = vld [vmem:[#allocation7] sm:$0xff]  ;;  %v241_v15 = vld [vmem:[#allocation7 + $0x8] sm:$0xff]  ;;  %s529_s23 = scalar_lea.vmem %s331_s22, 128  ;;  %p534_p13 = scmp.lt.s32.totalorder %s331_s22, %s331_s22 }
  0x5f   :  { %v105_v16 = vpack.c.bf16 %v104_v12, %v103_v11  ;;  %v242_v17 = vpack.c.bf16 %v241_v15, %v240_v14  ;;  %v355_v26 = vld [vmem:[%s735_s6] ss:$0 sm:$0xff]  ;;  %p530_p12 = scmp.ne.s32.totalorder %s331_s22, %s529_s23  ;;  %p535_p0 = scmp.lt.s32.totalorder %s529_s23, %s529_s23 }
  0x61   :  { %374 = vmatpush3.bf16.msra.mxu0 %v413_v3  ;;  %386 = vmatpush3.bf16.msra.mxu1 %v414_v4  ;;  %p536_p1 = por %p535_p0, %p534_p13 }
  0x62   :  { %375 = vmatprep.subr.bf16.mxu0 %v568_v0  ;;  %391 = vmatprep.subr.bf16.mxu1 %v568_v0 }
  0x63   :  { %p537_p2 = pnand %p536_p1, %p530_p12 }
  0x64   :  { %388 = vmatmul.mubr.msk.bf16.vlgmr.msra.gmra.mrb[0].mxu1 %vm195_vm1, %v98_v7 }
  0x65   :  { %376 = vmatpush3.bf16.msra.mxu0 %v415_v8  ;;  %392 = vmatpush3.bf16.msra.mxu1 %v416_v9 }
  0x66   :  { %377 = vmatprep.subr.bf16.mxu0 %v568_v0  ;;  %393 = vmatprep.subr.bf16.mxu1 %v568_v0 }
  0x67   :  { %395 = vmatprep.mubr.msk.bf16.mxu1 %vm569_vm0, %v568_v0 }
  0x69   :  { %378 = vmatpush3.bf16.msra.mxu0 %v417_v10  ;;  %394 = vmatpush3.bf16.msra.mxu1 %v418_v13 }
  0x6c   :  { %380 = vmatmul.mubr.msk.bf16.vlgmr.msra.gmra.mrb[0].mxu0 %vm138_vm2, %v105_v16  ;;  %396 = vmatmul.mubr.msk.bf16.vlgmr.msra.gmra.mrb[4].mxu1 %vm195_vm1, %v242_v17 }
 0x137   :  { %v233_v18 = vpop.f32.mrb[0].mxu1 }
 0x138   :  { %v389_v19 = vpop.f32.mrb[1].mxu1 }
 0x139   :  { %v236_v20 = vpop.f32.mrb[2].mxu1 }
 0x13a   :  { %v390_v21 = vpop.f32.mrb[3].mxu1 }
 0x13f   :  { %v176_v22 = vpop.f32.mrb[0].mxu0  ;;  %v296_v24 = vpop.f32.mrb[4].mxu1 }
 0x140   :  { %v234_v23 = vadd.f32 %v233_v18, %v176_v22  ;;  %v381_v25 = vpop.f32.mrb[1].mxu0  ;;  %v397_v27 = vpop.f32.mrb[5].mxu1 }
 0x141   :  { %v179_v28 = vpop.f32.mrb[2].mxu0  ;;  %v299_v31 = vpop.f32.mrb[6].mxu1 }
 0x142   :  { %v303_v29 = vadd.f32 %v296_v24, %v234_v23  ;;  %v237_v30 = vadd.f32 %v236_v20, %v179_v28  ;;  %v382_v32 = vpop.f32.mrb[3].mxu0  ;;  %v398_v33 = vpop.f32.mrb[7].mxu1 }
 0x144   :  { %v312_v34 = vadd.f32 %v355_v26, %v303_v29  ;;  %v304_v35 = vadd.f32 %v299_v31, %v237_v30 }
 0x146   :  { %v358_v36 = vpack.c.bf16 %v312_v34, %v312_v34  ;;  %v313_v37 = vadd.f32 %v355_v26, %v304_v35 }
 0x148   :  { %v359_v38 = vpack.c.bf16 %v313_v37, %v313_v37  ;;  %323 = vst.msk [vmem:[#allocation11] sm:$0xf] %vm322_vm3, %v358_v36 }
 0x14a   :  { %324 = vst.msk [vmem:[#allocation11 + $0x4] sm:$0xf] %vm322_vm3, %v359_v38 }
 0x14b   :  { %540 = shalt.err (!%p537_p2)
}
 0x14c   :  { %s541_s26 = scalar_lea.hbm %s736_s7, 128 }
 0x14d   :  { %p542_p3 = scmp.ne.s32.totalorder %s736_s7, %s541_s26  ;;  %p545_p4 = scmp.lt.u32.totalorder %s541_s26, %s736_s7 }
 0x14f   :  { %p547_p5 = pnand %p545_p4, %p542_p3 }
 0x151   :  { %550 = shalt.err (!%p547_p5)
}
 0x152   :  { %336 = dma.vmem_to_hbm [thread:$0]  %s331_s22, 128, %s736_s7, [#allocation4], %s563_s1, %s563_s1, %s564_s25  }
 0x153   :  { %557 = dma.done.wait [#allocation4], 128  }
 0x154   :  { %558 = vsyncadd [#allocation4], 4294967168 }
 0x155   :  { %340 = vsyncpa [#allocation3], 1 }
 0x156   :  { %341 = vsyncpa [#allocation6], 1 }
 0x157   :  { %342 = vsyncpa [#allocation9], 1 }
 0x158   :  { %343 = vsyncpa [#allocation4], 1 }

</bundles_post_ra>
